<compile_context>
chip_gen: v6e
topology: v6e:2x2x1
jax: 0.10.0
libtpu: 0.0.40
codegen_flags: <defaults>
</compile_context>

<pallas_src>
import functools

import jax
import jax.numpy as jnp
from jax.experimental import pallas as pl
from jax.experimental.pallas import tpu as pltpu

IN_DIM = 784
HID_DIM = 128
OUT_DIM = 10
OUT_PAD = 128  # lane-dense padded output width


def _round_up(n: int, m: int) -> int:
    return ((n + m - 1) // m) * m


def mlp_kernel(x_ref, w1_ref, b1_ref, w2_ref, b2_ref, o_ref):
    # Hidden layer: (TM, 784) @ (784, 128) + (1, 128)
    h = jnp.dot(x_ref[...], w1_ref[...], preferred_element_type=jnp.float32)
    h = h + b1_ref[...]
    # Sigmoid: exp on EUP, approximate reciprocal also on EUP (free slot).
    h = pl.reciprocal(1.0 + jnp.exp(-h), approx=True)
    # Output layer (padded to lane-dense N=128): (TM, 128) @ (128, 128) + (1, 128)
    out = jnp.dot(h, w2_ref[...], preferred_element_type=jnp.float32)
    o_ref[...] = (out + b2_ref[...]).astype(o_ref.dtype)


@functools.partial(jax.jit, static_argnames=("tm",))
def mlp_forward(x, w1, b1, w2, b2, *, tm: int = 512):
    """x: (B, 784) f32; w1: (784,128); b1: (1,128); w2: (128,10); b2: (1,10)."""
    B = x.shape[0]

    # Pick the batch tile: at most `tm` (sweep 512-2048 for large B), but never
    # larger than the (sublane-rounded) batch itself for small demos.
    tm_eff = min(tm, _round_up(B, 8))
    b_pad = _round_up(B, tm_eff)
    num_tiles = b_pad // tm_eff

    # Zero-pad batch to a multiple of the tile and the output layer to a
    # lane-dense 128 columns.
    x_p = jnp.pad(x, ((0, b_pad - B), (0, 0)))
    w2_p = jnp.pad(w2, ((0, 0), (0, OUT_PAD - OUT_DIM)))
    b2_p = jnp.pad(b2, ((0, 0), (0, OUT_PAD - OUT_DIM)))

    # Double-buffered per-step VMEM footprint (inputs + output + weights), with
    # headroom; weights are small (~0.4 MB) so this stays tiny.
    itemsize = 4
    tile_bytes = 2 * itemsize * (
        tm_eff * IN_DIM          # x tile
        + tm_eff * OUT_PAD       # out tile
        + IN_DIM * HID_DIM       # w1
        + HID_DIM                # b1
        + HID_DIM * OUT_PAD      # w2 (padded)
        + OUT_PAD                # b2 (padded)
    )
    vmem_limit = min(96 * 1024 * 1024, max(16 * 1024 * 1024, int(tile_bytes * 2)))

    cost = pl.CostEstimate(
        flops=2 * b_pad * IN_DIM * HID_DIM + 2 * b_pad * HID_DIM * OUT_PAD,
        transcendentals=b_pad * HID_DIM,
        bytes_accessed=itemsize * (
            b_pad * IN_DIM + IN_DIM * HID_DIM + HID_DIM
            + HID_DIM * OUT_PAD + OUT_PAD + b_pad * OUT_PAD
        ),
    )

    out_padded = pl.pallas_call(
        mlp_kernel,
        out_shape=jax.ShapeDtypeStruct((b_pad, OUT_PAD), jnp.float32),
        grid=(num_tiles,),
        in_specs=[
            pl.BlockSpec((tm_eff, IN_DIM), lambda i: (i, 0)),     # x: batch-tiled
            pl.BlockSpec((IN_DIM, HID_DIM), lambda i: (0, 0)),    # w1: resident
            pl.BlockSpec((1, HID_DIM), lambda i: (0, 0)),         # b1: resident
            pl.BlockSpec((HID_DIM, OUT_PAD), lambda i: (0, 0)),   # w2: resident
            pl.BlockSpec((1, OUT_PAD), lambda i: (0, 0)),         # b2: resident
        ],
        out_specs=pl.BlockSpec((tm_eff, OUT_PAD), lambda i: (i, 0)),
        compiler_params=pltpu.CompilerParams(
            dimension_semantics=("parallel",),
            vmem_limit_bytes=vmem_limit,
        ),
        cost_estimate=cost,
    )(x_p, w1, b1, w2_p, b2_p)

    # Strip batch padding and the lane padding of the output layer.
    return out_padded[:B, :OUT_DIM]


def init_params(key):
    # Deterministic init mimicking nn.Linear's U(-1/sqrt(fan_in), 1/sqrt(fan_in)).
    k1, k2, k3, k4 = jax.random.split(key, 4)
    bound1 = 1.0 / jnp.sqrt(jnp.float32(IN_DIM))
    bound2 = 1.0 / jnp.sqrt(jnp.float32(HID_DIM))
    # Stored as (in, out) = transpose of PyTorch's (out, in) weight layout.
    w1 = jax.random.uniform(k1, (IN_DIM, HID_DIM), jnp.float32, -bound1, bound1)
    b1 = jax.random.uniform(k2, (1, HID_DIM), jnp.float32, -bound1, bound1)
    w2 = jax.random.uniform(k3, (HID_DIM, OUT_DIM), jnp.float32, -bound2, bound2)
    b2 = jax.random.uniform(k4, (1, OUT_DIM), jnp.float32, -bound2, bound2)
    return w1, b1, w2, b2


def reference_forward(x, w1, b1, w2, b2):
    h = jax.nn.sigmoid(x @ w1 + b1)
    return h @ w2 + b2


if __name__ == "__main__":
    key = jax.random.PRNGKey(0)
    kx, kp = jax.random.split(key)

    batch = 8
    x = jax.random.normal(kx, (batch, IN_DIM), jnp.float32)
    w1, b1, w2, b2 = init_params(kp)

    out = mlp_forward(x, w1, b1, w2, b2)
    out = jax.block_until_ready(out)

    ref = reference_forward(x, w1, b1, w2, b2)
    assert out.shape == (batch, OUT_DIM)
    # Tolerance loosened slightly because the sigmoid uses the EUP approximate
    # reciprocal (pl.reciprocal(..., approx=True)).
    assert jnp.allclose(out, ref, atol=5e-3, rtol=1e-2), "mismatch vs reference"

    print("KERNEL_OK")
</pallas_src>

<mosaic_0001>
module attributes {stable_mosaic.version = 11 : i64} {
  func.func @mlp_kernel(%arg0: i32, %arg1: memref<8x784xf32, #tpu.memory_space<vmem>>, %arg2: memref<784x128xf32, #tpu.memory_space<vmem>>, %arg3: memref<1x128xf32, #tpu.memory_space<vmem>>, %arg4: memref<128x128xf32, #tpu.memory_space<vmem>>, %arg5: memref<1x128xf32, #tpu.memory_space<vmem>>, %arg6: memref<8x128xf32, #tpu.memory_space<vmem>>) attributes {dimension_semantics = [#tpu.dimension_semantics<parallel>], iteration_bounds = array<i64: 1>, scalar_prefetch = 0 : i64, scratch_operands = 0 : i64, tpu.core_type = #tpu.core_type<tc>, window_params = [{transform_indices = @transform_0, window_bounds = array<i64: 8, 784>}, {pipeline_mode = #tpu.pipeline_mode<synchronous>, transform_indices = @transform_1, window_bounds = array<i64: 784, 128>}, {pipeline_mode = #tpu.pipeline_mode<synchronous>, transform_indices = @transform_2, window_bounds = array<i64: 1, 128>}, {pipeline_mode = #tpu.pipeline_mode<synchronous>, transform_indices = @transform_3, window_bounds = array<i64: 128, 128>}, {pipeline_mode = #tpu.pipeline_mode<synchronous>, transform_indices = @transform_4, window_bounds = array<i64: 1, 128>}, {transform_indices = @transform_5, window_bounds = array<i64: 8, 128>}]} {
    %c0 = arith.constant 0 : index
    %c0_0 = arith.constant 0 : index
    %0 = vector.load %arg1[%c0, %c0_0] : memref<8x784xf32, #tpu.memory_space<vmem>>, vector<8x784xf32>
    %c0_1 = arith.constant 0 : index
    %c0_2 = arith.constant 0 : index
    %1 = vector.load %arg2[%c0_1, %c0_2] : memref<784x128xf32, #tpu.memory_space<vmem>>, vector<784x128xf32>
    %cst = arith.constant dense<0.000000e+00> : vector<8x128xf32>
    %2 = tpu.matmul %0, %1, %cst {dimension_numbers = #tpu.dot_dimension_numbers<[1], [0], [0], [1], [0, 0, 1, 1], [], []>} : vector<8x784xf32>, vector<784x128xf32>, vector<8x128xf32> -> vector<8x128xf32>
    %c0_3 = arith.constant 0 : index
    %c0_4 = arith.constant 0 : index
    %3 = vector.load %arg3[%c0_3, %c0_4] : memref<1x128xf32, #tpu.memory_space<vmem>>, vector<1x128xf32>
    %4 = vector.broadcast %3 : vector<1x128xf32> to vector<8x128xf32>
    %5 = arith.addf %2, %4 : vector<8x128xf32>
    %cst_5 = arith.constant 0.000000e+00 : f32
    %6 = vector.broadcast %cst_5 : f32 to vector<8x128xf32>
    %7 = arith.subf %6, %5 : vector<8x128xf32>
    %8 = math.exp %7 : vector<8x128xf32>
    %cst_6 = arith.constant 1.000000e+00 : f32
    %9 = vector.broadcast %cst_6 : f32 to vector<8x128xf32>
    %10 = arith.addf %9, %8 : vector<8x128xf32>
    %11 = tpu.reciprocal %10 {approx = true} : vector<8x128xf32> -> vector<8x128xf32>
    %c0_7 = arith.constant 0 : index
    %c0_8 = arith.constant 0 : index
    %12 = vector.load %arg4[%c0_7, %c0_8] : memref<128x128xf32, #tpu.memory_space<vmem>>, vector<128x128xf32>
    %cst_9 = arith.constant dense<0.000000e+00> : vector<8x128xf32>
    %13 = tpu.matmul %11, %12, %cst_9 {dimension_numbers = #tpu.dot_dimension_numbers<[1], [0], [0], [1], [0, 0, 1, 1], [], []>} : vector<8x128xf32>, vector<128x128xf32>, vector<8x128xf32> -> vector<8x128xf32>
    %c0_10 = arith.constant 0 : index
    %c0_11 = arith.constant 0 : index
    %14 = vector.load %arg5[%c0_10, %c0_11] : memref<1x128xf32, #tpu.memory_space<vmem>>, vector<1x128xf32>
    %15 = vector.broadcast %14 : vector<1x128xf32> to vector<8x128xf32>
    %16 = arith.addf %13, %15 : vector<8x128xf32>
    %c0_12 = arith.constant 0 : index
    %c0_13 = arith.constant 0 : index
    %17 = vector.load %arg6[%c0_12, %c0_13] : memref<8x128xf32, #tpu.memory_space<vmem>>, vector<8x128xf32>
    tpu.vector_store %arg6[%c0_12, %c0_13], %16 {strides = array<i32>} : memref<8x128xf32, #tpu.memory_space<vmem>>, vector<8x128xf32>,
    return
  }
  func.func @transform_0(%arg0: i32) -> (i32, i32) {
    %c0_i32 = arith.constant 0 : i32
    %c0_i32_0 = arith.constant 0 : i32
    return %arg0, %c0_i32 : i32, i32
  }
  func.func @transform_1(%arg0: i32) -> (i32, i32) {
    %c0_i32 = arith.constant 0 : i32
    %c0_i32_0 = arith.constant 0 : i32
    %c0_i32_1 = arith.constant 0 : i32
    return %c0_i32, %c0_i32_0 : i32, i32
  }
  func.func @transform_2(%arg0: i32) -> (i32, i32) {
    %c0_i32 = arith.constant 0 : i32
    %c0_i32_0 = arith.constant 0 : i32
    %c0_i32_1 = arith.constant 0 : i32
    return %c0_i32, %c0_i32_0 : i32, i32
  }
  func.func @transform_3(%arg0: i32) -> (i32, i32) {
    %c0_i32 = arith.constant 0 : i32
    %c0_i32_0 = arith.constant 0 : i32
    %c0_i32_1 = arith.constant 0 : i32
    return %c0_i32, %c0_i32_0 : i32, i32
  }
  func.func @transform_4(%arg0: i32) -> (i32, i32) {
    %c0_i32 = arith.constant 0 : i32
    %c0_i32_0 = arith.constant 0 : i32
    %c0_i32_1 = arith.constant 0 : i32
    return %c0_i32, %c0_i32_0 : i32, i32
  }
  func.func @transform_5(%arg0: i32) -> (i32, i32) {
    %c0_i32 = arith.constant 0 : i32
    %c0_i32_0 = arith.constant 0 : i32
    return %arg0, %c0_i32 : i32, i32
  }
}

</mosaic_0001>

<bundles_post_ra>
// kernel: mlp_forward.1
= control target key start
LH: loop header
LB: loop body
LE: loop exit
PB: predicated region body
PF: predicated region fallthrough
CT: control target
= control target key end

     0   :  { %10 = vsyncpa [#allocation3], 0  ;;  %s906_s0 = inlined_call_operand.vmem [shape: f32[8,784], index: 0, kind: input, shape index: {}]   ;;  %s907_s1 = inlined_call_operand.hbm [shape: f32[784,128], index: 1, kind: input, shape index: {}]   ;;  %s908_s2 = inlined_call_operand.vmem [shape: f32[1,128], index: 2, kind: input, shape index: {}]   ;;  %s909_s3 = inlined_call_operand.vmem [shape: f32[128,128], index: 3, kind: input, shape index: {}]   ;;  %s910_s4 = inlined_call_operand.vmem [shape: f32[1,128], index: 4, kind: input, shape index: {}]   ;;  %s911_s5 = inlined_call_operand.hbm [shape: f32[8,128], index: 5, kind: output, shape index: {}]  }
   0x1   :  { %11 = vsyncpa [#allocation4], 0  ;;  %s769_s18 = smov [#allocation2]  }
   0x2   :  { %s19_s19 = sshll.u32 %s769_s18, 4  ;;  %s20_s19 = int_to_ptr.vmem [resolvable:$true] %s19_s19 }
   0x3   :  { %s733_s20 = scalar_lea.vmem %s20_s19, 12544  ;;  %p738_p1 = scmp.lt.s32.totalorder %s20_s19, %s20_s19 }
   0x4   :  { %p734_p0 = scmp.ne.s32.totalorder %s20_s19, %s733_s20  ;;  %p739_p2 = scmp.lt.s32.totalorder %s733_s20, %s733_s20 }
   0x6   :  { %p740_p3 = por %p739_p2, %p738_p1 }
   0x8   :  { %p741_p4 = pnand %p740_p3, %p734_p0 }
   0xa   :  { %744 = shalt.err (!%p741_p4)
}
   0xb   :  { %s770_s21 = smov 128   ;;  %s771_s22 = smov 8  }
   0xc   :  { %25 = dma.hbm_to_vmem [thread:$0]  %s907_s1, 12544, %s20_s19, [#allocation3], %s770_s21, %s770_s21, %s771_s22  }
   0xd   :  { %765 = dma.done.wait [#allocation3], 12544  }
   0xe   :  { %766 = vsyncadd [#allocation3], 4294954752  ;;  %v73_v0 = vld [vmem:[#allocation2 + $0xf8] sm:$0xff]  ;;  %v72_v2 = vld [vmem:[#allocation2 + $0xf0] sm:$0xff]  ;;  %vm147_vm0 = vcmask 130048   ;;  %vm773_vm1 = vmmov 0  }
   0xf   :  { %v57_v1 = vld [vmem:[#allocation2 + $0x78] sm:$0xff]  ;;  %548 = vmatprep.subr.mxu0 %v73_v0  ;;  %v56_v4 = vld [vmem:[#allocation2 + $0x70] sm:$0xff]  ;;  %v71_v6 = vld [vmem:[#allocation2 + $0xe8] sm:$0xff] }
  0x10   :  { %v105_v3 = vld [vmem:[#allocation2 + $0x1f8] sm:$0xff]  ;;  %549 = vmatpush3.msra.mxu0 %v57_v1  ;;  %v104_v7 = vld [vmem:[#allocation2 + $0x1f0] sm:$0xff]  ;;  %v55_v8 = vld [vmem:[#allocation2 + $0x68] sm:$0xff] }
  0x11   :  { %v89_v5 = vld [vmem:[#allocation2 + $0x178] sm:$0xff]  ;;  %583 = vmatprep.subr.mxu1 %v105_v3  ;;  %550 = vmatprep.subr.mxu0 %v72_v2  ;;  %v88_v9 = vld [vmem:[#allocation2 + $0x170] sm:$0xff]  ;;  %v103_v10 = vld [vmem:[#allocation2 + $0x1e8] sm:$0xff] }
  0x12   :  { %584 = vmatpush3.msra.mxu1 %v89_v5  ;;  %551 = vmatpush3.msra.mxu0 %v56_v4  ;;  %v70_v11 = vld [vmem:[#allocation2 + $0xe0] sm:$0xff]  ;;  %v87_v12 = vld [vmem:[#allocation2 + $0x168] sm:$0xff]  ;;  %v69_v15 = vld [vmem:[#allocation2 + $0xd8] sm:$0xff] }
  0x13   :  { %585 = vmatprep.subr.mxu1 %v104_v7  ;;  %552 = vmatprep.subr.mxu0 %v71_v6  ;;  %v54_v13 = vld [vmem:[#allocation2 + $0x60] sm:$0xff]  ;;  %v53_v17 = vld [vmem:[#allocation2 + $0x58] sm:$0xff]  ;;  %v68_v19 = vld [vmem:[#allocation2 + $0xd0] sm:$0xff] }
  0x14   :  { %586 = vmatpush3.msra.mxu1 %v88_v9  ;;  %v102_v14 = vld [vmem:[#allocation2 + $0x1e0] sm:$0xff]  ;;  %553 = vmatpush3.msra.mxu0 %v55_v8  ;;  %v101_v18 = vld [vmem:[#allocation2 + $0x1d8] sm:$0xff]  ;;  %v52_v21 = vld [vmem:[#allocation2 + $0x50] sm:$0xff] }
  0x15   :  { %587 = vmatprep.subr.mxu1 %v103_v10  ;;  %v86_v16 = vld [vmem:[#allocation2 + $0x160] sm:$0xff]  ;;  %554 = vmatprep.subr.mxu0 %v70_v11  ;;  %v85_v20 = vld [vmem:[#allocation2 + $0x158] sm:$0xff]  ;;  %v100_v22 = vld [vmem:[#allocation2 + $0x1d0] sm:$0xff] }
  0x16   :  { %588 = vmatpush3.msra.mxu1 %v87_v12  ;;  %555 = vmatpush3.msra.mxu0 %v54_v13  ;;  %v67_v23 = vld [vmem:[#allocation2 + $0xc8] sm:$0xff]  ;;  %v84_v24 = vld [vmem:[#allocation2 + $0x150] sm:$0xff]  ;;  %v66_v27 = vld [vmem:[#allocation2 + $0xc0] sm:$0xff] }
  0x17   :  { %589 = vmatprep.subr.mxu1 %v102_v14  ;;  %556 = vmatprep.subr.mxu0 %v69_v15  ;;  %v51_v25 = vld [vmem:[#allocation2 + $0x48] sm:$0xff]  ;;  %v50_v29 = vld [vmem:[#allocation2 + $0x40] sm:$0xff]  ;;  %v65_v31 = vld [vmem:[#allocation2 + $0xb8] sm:$0xff]  ;;  %v772_v14 = vmov 0.0  }
  0x18   :  { %590 = vmatpush3.msra.mxu1 %v86_v16  ;;  %557 = vmatpush3.msra.mxu0 %v53_v17  ;;  %v99_v26 = vld [vmem:[#allocation2 + $0x1c8] sm:$0xff]  ;;  %v98_v30 = vld [vmem:[#allocation2 + $0x1c0] sm:$0xff]  ;;  %v49_v33 = vld [vmem:[#allocation2 + $0x38] sm:$0xff] }
  0x19   :  { %591 = vmatprep.subr.mxu1 %v101_v18  ;;  %558 = vmatprep.subr.mxu0 %v68_v19  ;;  %v83_v28 = vld [vmem:[#allocation2 + $0x148] sm:$0xff]  ;;  %v82_v32 = vld [vmem:[#allocation2 + $0x140] sm:$0xff]  ;;  %v97_v34 = vld [vmem:[#allocation2 + $0x1b8] sm:$0xff] }
  0x1a   :  { %592 = vmatpush3.msra.mxu1 %v85_v20  ;;  %559 = vmatpush3.msra.mxu0 %v52_v21  ;;  %v64_v35 = vld [vmem:[#allocation2 + $0xb0] sm:$0xff]  ;;  %v81_v36 = vld [vmem:[#allocation2 + $0x138] sm:$0xff]  ;;  %v63_v39 = vld [vmem:[#allocation2 + $0xa8] sm:$0xff] }
  0x1b   :  { %593 = vmatprep.subr.mxu1 %v100_v22  ;;  %560 = vmatprep.subr.mxu0 %v67_v23  ;;  %v48_v37 = vld [vmem:[#allocation2 + $0x30] sm:$0xff]  ;;  %v47_v41 = vld [vmem:[#allocation2 + $0x28] sm:$0xff]  ;;  %v62_v43 = vld [vmem:[#allocation2 + $0xa0] sm:$0xff] }
  0x1c   :  { %594 = vmatpush3.msra.mxu1 %v84_v24  ;;  %561 = vmatpush3.msra.mxu0 %v51_v25  ;;  %v96_v38 = vld [vmem:[#allocation2 + $0x1b0] sm:$0xff]  ;;  %v95_v42 = vld [vmem:[#allocation2 + $0x1a8] sm:$0xff]  ;;  %v46_v45 = vld [vmem:[#allocation2 + $0x20] sm:$0xff] }
  0x1d   :  { %595 = vmatprep.subr.mxu1 %v99_v26  ;;  %562 = vmatprep.subr.mxu0 %v66_v27  ;;  %v80_v40 = vld [vmem:[#allocation2 + $0x130] sm:$0xff]  ;;  %v79_v44 = vld [vmem:[#allocation2 + $0x128] sm:$0xff]  ;;  %v94_v46 = vld [vmem:[#allocation2 + $0x1a0] sm:$0xff] }
  0x1e   :  { %596 = vmatpush3.msra.mxu1 %v83_v28  ;;  %563 = vmatpush3.msra.mxu0 %v50_v29  ;;  %v61_v47 = vld [vmem:[#allocation2 + $0x98] sm:$0xff]  ;;  %v78_v48 = vld [vmem:[#allocation2 + $0x120] sm:$0xff]  ;;  %v60_v51 = vld [vmem:[#allocation2 + $0x90] sm:$0xff] }
  0x1f   :  { %597 = vmatprep.subr.mxu1 %v98_v30  ;;  %564 = vmatprep.subr.mxu0 %v65_v31  ;;  %v45_v49 = vld [vmem:[#allocation2 + $0x18] sm:$0xff]  ;;  %v44_v53 = vld [vmem:[#allocation2 + $0x10] sm:$0xff]  ;;  %v59_v55 = vld [vmem:[#allocation2 + $0x88] sm:$0xff] }
  0x20   :  { %598 = vmatpush3.msra.mxu1 %v82_v32  ;;  %565 = vmatpush3.msra.mxu0 %v49_v33  ;;  %v93_v50 = vld [vmem:[#allocation2 + $0x198] sm:$0xff]  ;;  %v92_v54 = vld [vmem:[#allocation2 + $0x190] sm:$0xff]  ;;  %v43_v57 = vld [vmem:[#allocation2 + $0x8] sm:$0xff] }
  0x21   :  { %599 = vmatprep.subr.mxu1 %v97_v34  ;;  %566 = vmatprep.subr.mxu0 %v64_v35  ;;  %v77_v52 = vld [vmem:[#allocation2 + $0x118] sm:$0xff]  ;;  %v76_v56 = vld [vmem:[#allocation2 + $0x110] sm:$0xff]  ;;  %v91_v58 = vld [vmem:[#allocation2 + $0x188] sm:$0xff] }
  0x22   :  { %600 = vmatpush3.msra.mxu1 %v81_v36  ;;  %567 = vmatpush3.msra.mxu0 %v48_v37  ;;  %v58_v59 = vld [vmem:[#allocation2 + $0x80] sm:$0xff]  ;;  %v36_v60 = vld [vmem:[%s906_s0 + $0x8] sm:$0xff]  ;;  %v137_v1 = vld [vmem:[#allocation2 + $0x2f8] sm:$0xff] }
  0x23   :  { %601 = vmatprep.subr.mxu1 %v96_v38  ;;  %568 = vmatprep.subr.mxu0 %v63_v39  ;;  %v42_v61 = vld [vmem:[#allocation2] sm:$0xff]  ;;  %v75_v62 = vld [vmem:[#allocation2 + $0x108] sm:$0xff]  ;;  %v38_v3 = vld [vmem:[%s906_s0 + $0x18] sm:$0xff] }
  0x24   :  { %602 = vmatpush3.msra.mxu1 %v80_v40  ;;  %569 = vmatpush3.msra.mxu0 %v47_v41  ;;  %v35_v63 = vld [vmem:[%s906_s0] sm:$0xff]  ;;  %v121_v4 = vld [vmem:[#allocation2 + $0x278] sm:$0xff]  ;;  %v37_v5 = vld [vmem:[%s906_s0 + $0x10] sm:$0xff] }
  0x25   :  { %603 = vmatprep.subr.mxu1 %v95_v42  ;;  %570 = vmatprep.subr.mxu0 %v62_v43  ;;  %v90_v0 = vld [vmem:[#allocation2 + $0x180] sm:$0xff]  ;;  %v136_v6 = vld [vmem:[#allocation2 + $0x2f0] sm:$0xff]  ;;  %v40_v8 = vld [vmem:[%s906_s0 + $0x28] sm:$0xff] }
  0x26   :  { %604 = vmatpush3.msra.mxu1 %v79_v44  ;;  %571 = vmatpush3.msra.mxu0 %v46_v45  ;;  %v74_v2 = vld [vmem:[#allocation2 + $0x100] sm:$0xff]  ;;  %v120_v7 = vld [vmem:[#allocation2 + $0x270] sm:$0xff]  ;;  %v135_v9 = vld [vmem:[#allocation2 + $0x2e8] sm:$0xff] }
  0x27   :  { %605 = vmatprep.subr.mxu1 %v94_v46  ;;  %572 = vmatprep.subr.mxu0 %v61_v47  ;;  %v119_v10 = vld [vmem:[#allocation2 + $0x268] sm:$0xff]  ;;  %v134_v12 = vld [vmem:[#allocation2 + $0x2e0] sm:$0xff]  ;;  %v133_v16 = vld [vmem:[#allocation2 + $0x2d8] sm:$0xff] }
  0x28   :  { %606 = vmatpush3.msra.mxu1 %v78_v48  ;;  %573 = vmatpush3.msra.mxu0 %v45_v49  ;;  %v139_v11 = vld [vmem:[#allocation2 + $0x308] sm:$0xff]  ;;  %v118_v13 = vld [vmem:[#allocation2 + $0x260] sm:$0xff]  ;;  %v117_v17 = vld [vmem:[#allocation2 + $0x258] sm:$0xff] }
  0x29   :  { %607 = vmatprep.subr.mxu1 %v93_v50  ;;  %574 = vmatprep.subr.mxu0 %v60_v51  ;;  %v138_v15 = vld [vmem:[#allocation2 + $0x300] sm:$0xff]  ;;  %v41_v18 = vld [vmem:[%s906_s0 + $0x30] sm:$0xff]  ;;  %v131_v21 = vld [vmem:[#allocation2 + $0x2c8] sm:$0xff] }
  0x2a   :  { %608 = vmatpush3.msra.mxu1 %v77_v52  ;;  %575 = vmatpush3.msra.mxu0 %v44_v53  ;;  %v132_v19 = vld [vmem:[#allocation2 + $0x2d0] sm:$0xff]  ;;  %v115_v22 = vld [vmem:[#allocation2 + $0x248] sm:$0xff]  ;;  %v130_v23 = vld [vmem:[#allocation2 + $0x2c0] sm:$0xff] }
  0x2b   :  { %609 = vmatprep.subr.mxu1 %v92_v54  ;;  %576 = vmatprep.subr.mxu0 %v59_v55  ;;  %v116_v20 = vld [vmem:[#allocation2 + $0x250] sm:$0xff]  ;;  %v114_v24 = vld [vmem:[#allocation2 + $0x240] sm:$0xff]  ;;  %v129_v25 = vld [vmem:[#allocation2 + $0x2b8] sm:$0xff] }
  0x2c   :  { %610 = vmatpush3.msra.mxu1 %v76_v56  ;;  %577 = vmatpush3.msra.mxu0 %v43_v57  ;;  %v113_v26 = vld [vmem:[#allocation2 + $0x238] sm:$0xff]  ;;  %v128_v27 = vld [vmem:[#allocation2 + $0x2b0] sm:$0xff]  ;;  %v127_v29 = vld [vmem:[#allocation2 + $0x2a8] sm:$0xff] }
  0x2d   :  { %611 = vmatprep.subr.mxu1 %v91_v58  ;;  %578 = vmatprep.subr.mxu0 %v58_v59  ;;  %v112_v28 = vld [vmem:[#allocation2 + $0x230] sm:$0xff]  ;;  %v111_v30 = vld [vmem:[#allocation2 + $0x228] sm:$0xff]  ;;  %v126_v31 = vld [vmem:[#allocation2 + $0x2a0] sm:$0xff] }
  0x2e   :  { %215 = vmatprep.mubr.f32.mxu0 %v36_v60  ;;  %579 = vmatpush3.msra.mxu0 %v42_v61  ;;  %v110_v32 = vld [vmem:[#allocation2 + $0x220] sm:$0xff]  ;;  %v125_v33 = vld [vmem:[#allocation2 + $0x298] sm:$0xff]  ;;  %v124_v35 = vld [vmem:[#allocation2 + $0x290] sm:$0xff] }
  0x2f   :  { %612 = vmatpush3.msra.mxu1 %v75_v62  ;;  %216 = vmatmul.mubr.f32.vlgmr.msra.gmra.mxu0 %v35_v63  ;;  %v109_v34 = vld [vmem:[#allocation2 + $0x218] sm:$0xff]  ;;  %v108_v36 = vld [vmem:[#allocation2 + $0x210] sm:$0xff]  ;;  %v123_v37 = vld [vmem:[#allocation2 + $0x288] sm:$0xff] }
  0x30   :  { %613 = vmatprep.subr.mxu1 %v90_v0  ;;  %618 = vmatprep.subr.mxu0 %v137_v1  ;;  %v107_v38 = vld [vmem:[#allocation2 + $0x208] sm:$0xff]  ;;  %v122_v39 = vld [vmem:[#allocation2 + $0x280] sm:$0xff]  ;;  %v451_v42 = vld [vmem:[%s909_s3 + $0x78] sm:$0xff] }
  0x31   :  { %614 = vmatpush3.msra.mxu1 %v74_v2  ;;  %285 = vmatprep.mubr.f32.mxu1 %v38_v3  ;;  %v106_v40 = vld [vmem:[#allocation2 + $0x200] sm:$0xff]  ;;  %v450_v43 = vld [vmem:[%s909_s3 + $0x70] sm:$0xff]  ;;  %v449_v44 = vld [vmem:[%s909_s3 + $0x68] sm:$0xff] }
  0x32   :  { %619 = vmatpush3.msra.mxu0 %v121_v4  ;;  %286 = vmatmul.mubr.f32.vlgmr.msra.gmra.mxu1 %v37_v5  ;;  %v39_v41 = vld [vmem:[%s906_s0 + $0x20] sm:$0xff]  ;;  %v447_v46 = vld [vmem:[%s909_s3 + $0x58] sm:$0xff]  ;;  %v446_v47 = vld [vmem:[%s909_s3 + $0x50] sm:$0xff] }
  0x33   :  { %620 = vmatprep.subr.mxu0 %v136_v6  ;;  %355 = vmatprep.mubr.f32.mxu0 %v40_v8  ;;  %v448_v45 = vld [vmem:[%s909_s3 + $0x60] sm:$0xff]  ;;  %v445_v48 = vld [vmem:[%s909_s3 + $0x48] sm:$0xff]  ;;  %v443_v50 = vld [vmem:[%s909_s3 + $0x38] sm:$0xff] }
  0x34   :  { %621 = vmatpush3.msra.mxu0 %v120_v7  ;;  %673 = vmatprep.subr.mxu1 %v772_v14  ;;  %v444_v49 = vld [vmem:[%s909_s3 + $0x40] sm:$0xff]  ;;  %v442_v51 = vld [vmem:[%s909_s3 + $0x30] sm:$0xff]  ;;  %v441_v52 = vld [vmem:[%s909_s3 + $0x28] sm:$0xff] }
  0x35   :  { %622 = vmatprep.subr.mxu0 %v135_v9  ;;  %674 = vmatpush3.msra.mxu1 %v139_v11  ;;  %v440_v53 = vld [vmem:[%s909_s3 + $0x20] sm:$0xff]  ;;  %v439_v54 = vld [vmem:[%s909_s3 + $0x18] sm:$0xff]  ;;  %v438_v55 = vld [vmem:[%s909_s3 + $0x10] sm:$0xff] }
  0x36   :  { %623 = vmatpush3.msra.mxu0 %v119_v10  ;;  %675 = vmatprep.subr.mxu1 %v772_v14  ;;  %v437_v56 = vld [vmem:[%s909_s3 + $0x8] sm:$0xff]  ;;  %v436_v57 = vld [vmem:[%s909_s3] sm:$0xff] }
  0x37   :  { %624 = vmatprep.subr.mxu0 %v134_v12  ;;  %676 = vmatpush3.msra.mxu1 %v138_v15  ;;  %v545_v1 = vld [vmem:[%s908_s2] ss:$0 sm:$0xff]  ;;  %s774_s2 = smov [#allocation5]  }
  0x38   :  { %625 = vmatpush3.msra.mxu0 %v118_v13  ;;  %677 = vmatprep.mubr.msk.f32.mxu1 %vm773_vm1, %v772_v14  ;;  %v547_v15 = vld [vmem:[%s910_s4] ss:$0 sm:$0xff]  ;;  %s536_s20 = sshll.u32 %s774_s2, 4  ;;  %s537_s20 = int_to_ptr.vmem [resolvable:$true] %s536_s20 }
  0x39   :  { %626 = vmatprep.subr.mxu0 %v133_v16  ;;  %678 = vmatmul.mubr.msk.f32.vlgmr.msra.gmra.mxu1 %vm147_vm0, %v41_v18  ;;  %s745_s21 = scalar_lea.vmem %s537_s20, 128  ;;  %p750_p6 = scmp.lt.s32.totalorder %s537_s20, %s537_s20 }
  0x3a   :  { %627 = vmatpush3.msra.mxu0 %v117_v17  ;;  %680 = vmatprep.subr.mxu1 %v772_v14  ;;  %p746_p5 = scmp.ne.s32.totalorder %s537_s20, %s745_s21  ;;  %p751_p7 = scmp.lt.s32.totalorder %s745_s21, %s745_s21 }
  0x3b   :  { %628 = vmatprep.subr.mxu0 %v132_v19  ;;  %712 = vmatprep.mubr.msk.f32.mxu1 %vm773_vm1, %v772_v14 }
  0x3c   :  { %629 = vmatpush3.msra.mxu0 %v116_v20  ;;  %681 = vmatpush3.msra.mxu1 %v451_v42  ;;  %p752_p8 = por %p751_p7, %p750_p6 }
  0x3d   :  { %630 = vmatprep.subr.mxu0 %v131_v21  ;;  %682 = vmatprep.subr.mxu1 %v772_v14 }
  0x3e   :  { %631 = vmatpush3.msra.mxu0 %v115_v22  ;;  %683 = vmatpush3.msra.mxu1 %v450_v43  ;;  %p753_p9 = pnand %p752_p8, %p746_p5 }
  0x3f   :  { %632 = vmatprep.subr.mxu0 %v130_v23  ;;  %684 = vmatprep.subr.mxu1 %v772_v14 }
  0x40   :  { %633 = vmatpush3.msra.mxu0 %v114_v24  ;;  %685 = vmatpush3.msra.mxu1 %v449_v44 }
  0x41   :  { %634 = vmatprep.subr.mxu0 %v129_v25  ;;  %686 = vmatprep.subr.mxu1 %v772_v14 }
  0x42   :  { %635 = vmatpush3.msra.mxu0 %v113_v26  ;;  %687 = vmatpush3.msra.mxu1 %v448_v45 }
  0x43   :  { %636 = vmatprep.subr.mxu0 %v128_v27  ;;  %688 = vmatprep.subr.mxu1 %v772_v14 }
  0x44   :  { %637 = vmatpush3.msra.mxu0 %v112_v28  ;;  %689 = vmatpush3.msra.mxu1 %v447_v46 }
  0x45   :  { %638 = vmatprep.subr.mxu0 %v127_v29  ;;  %690 = vmatprep.subr.mxu1 %v772_v14 }
  0x46   :  { %639 = vmatpush3.msra.mxu0 %v111_v30  ;;  %691 = vmatpush3.msra.mxu1 %v446_v47 }
  0x47   :  { %640 = vmatprep.subr.mxu0 %v126_v31  ;;  %692 = vmatprep.subr.mxu1 %v772_v14 }
  0x48   :  { %641 = vmatpush3.msra.mxu0 %v110_v32  ;;  %693 = vmatpush3.msra.mxu1 %v445_v48 }
  0x49   :  { %642 = vmatprep.subr.mxu0 %v125_v33  ;;  %694 = vmatprep.subr.mxu1 %v772_v14 }
  0x4a   :  { %643 = vmatpush3.msra.mxu0 %v109_v34  ;;  %695 = vmatpush3.msra.mxu1 %v444_v49 }
  0x4b   :  { %644 = vmatprep.subr.mxu0 %v124_v35  ;;  %696 = vmatprep.subr.mxu1 %v772_v14 }
  0x4c   :  { %645 = vmatpush3.msra.mxu0 %v108_v36  ;;  %697 = vmatpush3.msra.mxu1 %v443_v50 }
  0x4d   :  { %646 = vmatprep.subr.mxu0 %v123_v37  ;;  %698 = vmatprep.subr.mxu1 %v772_v14 }
  0x4e   :  { %647 = vmatpush3.msra.mxu0 %v107_v38  ;;  %699 = vmatpush3.msra.mxu1 %v442_v51 }
  0x4f   :  { %648 = vmatprep.subr.mxu0 %v122_v39  ;;  %700 = vmatprep.subr.mxu1 %v772_v14 }
  0x50   :  { %649 = vmatpush3.msra.mxu0 %v106_v40  ;;  %701 = vmatpush3.msra.mxu1 %v441_v52 }
  0x51   :  { %356 = vmatmul.mubr.f32.vlgmr.msra.gmra.mxu0 %v39_v41  ;;  %702 = vmatprep.subr.mxu1 %v772_v14 }
  0x52   :  { %703 = vmatpush3.msra.mxu1 %v440_v53 }
  0x53   :  { %704 = vmatprep.subr.mxu1 %v772_v14 }
  0x54   :  { %705 = vmatpush3.msra.mxu1 %v439_v54 }
  0x55   :  { %706 = vmatprep.subr.mxu1 %v772_v14 }
  0x56   :  { %707 = vmatpush3.msra.mxu1 %v438_v55 }
  0x57   :  { %708 = vmatprep.subr.mxu1 %v772_v14 }
  0x58   :  { %709 = vmatpush3.msra.mxu1 %v437_v56 }
  0x59   :  { %710 = vmatprep.subr.mxu1 %v772_v14 }
  0x5a   :  { %711 = vmatpush3.msra.mxu1 %v436_v57 }
  0xef   :  { %v580_v62 = vpop.f32.mrf.mxu0 }
  0xf1   :  { %v581_v63 = vpop.f32.mrf.mxu0 }
  0xf2   :  { %v615_v58 = vpop.f32.mrf.mxu1  ;;  %v582_v0 = vadd.f32 %v581_v63, %v580_v62 }
  0xf4   :  { %v616_v59 = vpop.f32.mrf.mxu1  ;;  %v218_v2 = vadd.f32 %v582_v0, %v545_v1 }
  0xf5   :  { %v617_v3 = vadd.f32 %v616_v59, %v615_v58 }
  0xf7   :  { %v288_v6 = vadd.f32 %v617_v3, %v218_v2 }
  0xf9   :  { %v427_v60 = vpop.f32.mrf.mxu1 }
  0xfb   :  { %v679_v61 = vpop.f32.mrf.mxu1 }
 0x111   :  { %v650_v4 = vpop.f32.mrf.mxu0 }
 0x113   :  { %v651_v5 = vpop.f32.mrf.mxu0 }
 0x114   :  { %v652_v7 = vadd.f32 %v651_v5, %v650_v4 }
 0x116   :  { %v358_v8 = vadd.f32 %v652_v7, %v288_v6 }
 0x118   :  { %v428_v9 = vadd.f32 %v427_v60, %v358_v8 }
 0x11a   :  { %v431_v10 = vsub.f32 0.0, %v428_v9 }
 0x11c   :  { %v432_v11 = vmul.f32 1.442695, %v431_v10 }
 0x11e   :  { %721 = vpow2.f32 %v432_v11 }
 0x12b   :  { %v722_v12 = vpop.eup %721 }
 0x12c   :  { %v434_v13 = vadd.f32 1.0, %v722_v12 }
 0x12e   :  { %723 = vrcp.f32 %v434_v13 }
 0x13b   :  { %v724_v14 = vpop.eup %723 }
 0x13c   :  { %713 = vmatmul.mubr.f32.vlgmr.msra.gmra.mxu1 %v724_v14 }
 0x1fc   :  { %v525_v16 = vpop.f32.mrf.mxu1 }
 0x1fd   :  { %v526_v17 = vadd.f32 %v547_v15, %v525_v16 }
 0x1fe   :  { %v714_v18 = vpop.f32.mrf.mxu1 }
 0x1ff   :  { %529 = vst [vmem:[#allocation5] sm:$0xff] %v526_v17 }
 0x200   :  { %756 = shalt.err (!%p753_p9)
}
 0x201   :  { %539 = dma.vmem_to_hbm [thread:$0]  %s537_s20, 128, %s911_s5, [#allocation4]  }
 0x202   :  { %767 = dma.done.wait [#allocation4], 128  }
 0x203   :  { %768 = vsyncadd [#allocation4], 4294967168 }
 0x204   :  { %543 = vsyncpa [#allocation3], 1 }
 0x205   :  { %544 = vsyncpa [#allocation4], 1 }

</bundles_post_ra>
